<compile_context>
chip_gen: v7x
topology: tpu7x:2x2x1
jax: 0.10.0
libtpu: 0.0.40
codegen_flags: <defaults>
</compile_context>

<pallas_src>
import functools

import jax
import jax.numpy as jnp
from jax.experimental import pallas as pl
from jax.experimental.pallas import tpu as pltpu

LANE = 128
SUB = 8                     # sublane height of one f32 vreg
MAX_BLOCK_ROWS = 1024       # (1024, 128) f32 block = 512 KiB per input
_EPS_DICE = 1e-6
_LOG_CLAMP = -100.0         # torch F.binary_cross_entropy clamps log to >= -100


def _fold(x):
    """Fold a (block_rows, 128) tile into one (8, 128) vreg with VPU adds."""
    return x.reshape(-1, SUB, LANE).sum(axis=0)


def _masked_loss_kernel(p_ref, t_ref, m_ref, out_ref, acc_ref, *, metric):
    i = pl.program_id(0)

    @pl.when(i == 0)
    def _():
        acc_ref[...] = jnp.zeros_like(acc_ref)

    p = p_ref[...].astype(jnp.float32)
    t = t_ref[...].astype(jnp.float32)
    m = m_ref[...].astype(jnp.float32)

    pm = p * m
    tm = t * m
    if metric == 'L2':
        d = pm - tm
        elem = d * d
    elif metric == 'L1':
        elem = jnp.abs(pm - tm)
    else:
        # clamp logs first so 0 * log(0) -> 0 (matches torch's BCE clamp);
        # this also makes zero-padded tail elements contribute exactly 0.
        log_p = jnp.maximum(jnp.log(pm), _LOG_CLAMP)
        log_1mp = jnp.maximum(jnp.log(1.0 - pm), _LOG_CLAMP)
        bce = -(tm * log_p + (1.0 - tm) * log_1mp)
        if metric == 'BCE':
            elem = bce
        elif metric == 'focal':
            alpha = 0.25                                    # gamma = 2
            preds_t = pm * tm + (1.0 - pm) * (1.0 - tm)
            elem = bce * (1.0 - preds_t) * (1.0 - preds_t)
            alpha_t = alpha * tm + (1.0 - alpha) * (1.0 - tm)
            elem = alpha_t * elem
        else:
            raise NotImplementedError(metric)

    acc_ref[0] += _fold(elem)      # loss numerator
    acc_ref[1] += _fold(m)         # mask.sum() denominator

    @pl.when(i == pl.num_programs(0) - 1)
    def _():
        num = jnp.sum(acc_ref[0])
        den = jnp.sum(acc_ref[1])
        out_ref[0] = num / den


def _dice_loss_kernel(p_ref, t_ref, out_ref, acc_ref):
    # NOTE: the dice branch in the reference ignores the mask, so the mask
    # array is not streamed at all for this metric.
    i = pl.program_id(0)

    @pl.when(i == 0)
    def _():
        acc_ref[...] = jnp.zeros_like(acc_ref)

    p = p_ref[...].astype(jnp.float32)
    t = t_ref[...].astype(jnp.float32)

    acc_ref[0] += _fold(p * t)     # intersection
    acc_ref[1] += _fold(p)         # preds.sum()
    acc_ref[2] += _fold(t)         # targets.sum()

    @pl.when(i == pl.num_programs(0) - 1)
    def _():
        inter = jnp.sum(acc_ref[0])
        psum = jnp.sum(acc_ref[1])
        tsum = jnp.sum(acc_ref[2])
        dice = (2.0 * inter + _EPS_DICE) / (psum + tsum + _EPS_DICE)
        out_ref[0] = 1.0 - dice


def _lane_slab(x, rows):
    """Flatten (native dtype), zero-pad minimally, view as (rows, LANE)."""
    flat = x.reshape(-1)
    pad = rows * LANE - flat.size
    if pad:
        flat = jnp.pad(flat, (0, pad))     # zero / False pad contributes 0
    return flat.reshape(rows, LANE)


@functools.partial(jax.jit, static_argnames=('metric',))
def masked_loss(preds, targets, mask, metric='L2'):
    assert preds.shape == targets.shape == mask.shape
    n = preds.size

    # Choose the largest lane-dense block that comfortably fits VMEM.
    rows = pl.cdiv(n, LANE)
    rows = pl.cdiv(rows, SUB) * SUB
    if rows <= MAX_BLOCK_ROWS:
        block_rows = rows                  # single full-array block
    else:
        block_rows = MAX_BLOCK_ROWS
        rows = pl.cdiv(rows, block_rows) * block_rows
    grid = (rows // block_rows,)
    blk = pl.BlockSpec((block_rows, LANE), lambda i: (i, 0))

    # TODO(synk): on v7x the reduction could additionally be split across the
    # 2 TensorCores with a ("parallel", "arbitrary") grid and per-core partial
    # outputs combined in the wrapper.

    if metric == 'dice':
        inputs = (_lane_slab(preds, rows), _lane_slab(targets, rows))
        kernel = _dice_loss_kernel
        n_in = 2
        acc = pltpu.VMEM((3, SUB, LANE), jnp.float32)
    else:
        inputs = (_lane_slab(preds, rows), _lane_slab(targets, rows),
                  _lane_slab(mask, rows))
        kernel = functools.partial(_masked_loss_kernel, metric=metric)
        n_in = 3
        acc = pltpu.VMEM((2, SUB, LANE), jnp.float32)

    out = pl.pallas_call(
        kernel,
        out_shape=jax.ShapeDtypeStruct((1,), jnp.float32),
        grid=grid,
        in_specs=[blk] * n_in,
        out_specs=pl.BlockSpec(memory_space=pltpu.MemorySpace.SMEM),
        scratch_shapes=[acc],
        compiler_params=pltpu.CompilerParams(
            dimension_semantics=("arbitrary",)),
    )(*inputs)
    return out[0]


def _ref_masked_loss(preds, targets, mask, metric='L2'):
    """Pure-jnp reference mirroring the PyTorch module."""
    mask = mask.astype(jnp.float32)
    preds = preds.astype(jnp.float32)
    targets = targets.astype(jnp.float32)
    pm = preds * mask
    tm = targets * mask
    if metric == 'dice':
        inter = jnp.sum(preds * targets)
        dice = (2.0 * inter + _EPS_DICE) / (
            jnp.sum(preds) + jnp.sum(targets) + _EPS_DICE)
        return 1.0 - dice
    if metric == 'L2':
        loss = jnp.sum((pm - tm) ** 2)
    elif metric == 'L1':
        loss = jnp.sum(jnp.abs(pm - tm))
    else:
        log_p = jnp.maximum(jnp.log(pm), _LOG_CLAMP)
        log_1mp = jnp.maximum(jnp.log(1.0 - pm), _LOG_CLAMP)
        bce = -(tm * log_p + (1.0 - tm) * log_1mp)
        if metric == 'BCE':
            loss = jnp.sum(bce)
        else:  # focal
            preds_t = pm * tm + (1.0 - pm) * (1.0 - tm)
            fl = bce * (1.0 - preds_t) ** 2
            alpha_t = 0.25 * tm + 0.75 * (1.0 - tm)
            loss = jnp.sum(alpha_t * fl)
    return loss / jnp.sum(mask)


if __name__ == "__main__":
    key = jax.random.PRNGKey(0)
    kp, kt, km = jax.random.split(key, 3)
    shape = (2, 4, 16, 16)  # N, C, H, W

    preds = jax.random.uniform(kp, shape, dtype=jnp.float32)            # in [0, 1)
    targets = jax.random.bernoulli(kt, 0.5, shape).astype(jnp.float32)  # {0, 1}
    mask = jax.random.bernoulli(km, 0.7, shape)                         # bool mask (native dtype)

    ok = True
    for metric in ('L2', 'L1', 'BCE', 'focal', 'dice'):
        got = jax.block_until_ready(masked_loss(preds, targets, mask, metric=metric))
        want = _ref_masked_loss(preds, targets, mask, metric=metric)
        if not jnp.allclose(got, want, rtol=1e-5, atol=1e-5):
            ok = False
            print(f"MISMATCH metric={metric}: kernel={got} ref={want}")

    if ok:
        print("KERNEL_OK")
</pallas_src>

<mosaic_0001>
module attributes {stable_mosaic.version = 11 : i64} {
  func.func @_masked_loss_kernel(%arg0: i32, %arg1: memref<16x128xf32, #tpu.memory_space<vmem>>, %arg2: memref<16x128xf32, #tpu.memory_space<vmem>>, %arg3: memref<16x128xi32, #tpu.memory_space<vmem>>, %arg4: memref<1xf32, #tpu.memory_space<smem>>, %arg5: memref<2x8x128xf32, #tpu.memory_space<vmem>>) attributes {dimension_semantics = [#tpu.dimension_semantics<arbitrary>], iteration_bounds = array<i64: 1>, scalar_prefetch = 0 : i64, scratch_operands = 1 : i64, tpu.core_type = #tpu.core_type<tc>, window_params = [{transform_indices = @transform_0, window_bounds = array<i64: 16, 128>}, {transform_indices = @transform_1, window_bounds = array<i64: 16, 128>}, {transform_indices = @transform_2, window_bounds = array<i64: 16, 128>}, {transform_indices = @transform_3, window_bounds = array<i64: 1>}]} {
    %c0_i32 = arith.constant 0 : i32
    %0 = arith.cmpi eq, %arg0, %c0_i32 : i32
    %1 = arith.extui %0 : i1 to i32
    %c0_i32_0 = arith.constant 0 : i32
    %2 = arith.cmpi ne, %1, %c0_i32_0 : i32
    scf.if %2 {
      %cst_21 = arith.constant 0.000000e+00 : f32
      %32 = vector.broadcast %cst_21 : f32 to vector<2x8x128xf32>
      %c0_22 = arith.constant 0 : index
      %c0_23 = arith.constant 0 : index
      %c0_24 = arith.constant 0 : index
      %33 = vector.load %arg5[%c0_22, %c0_23, %c0_24] : memref<2x8x128xf32, #tpu.memory_space<vmem>>, vector<2x8x128xf32>
      tpu.vector_store %arg5[%c0_22, %c0_23, %c0_24], %32 {strides = array<i32>} : memref<2x8x128xf32, #tpu.memory_space<vmem>>, vector<2x8x128xf32>,
    } else {
    }
    %c0 = arith.constant 0 : index
    %c0_1 = arith.constant 0 : index
    %3 = vector.load %arg1[%c0, %c0_1] : memref<16x128xf32, #tpu.memory_space<vmem>>, vector<16x128xf32>
    %c0_2 = arith.constant 0 : index
    %c0_3 = arith.constant 0 : index
    %4 = vector.load %arg2[%c0_2, %c0_3] : memref<16x128xf32, #tpu.memory_space<vmem>>, vector<16x128xf32>
    %c0_4 = arith.constant 0 : index
    %c0_5 = arith.constant 0 : index
    %5 = vector.load %arg3[%c0_4, %c0_5] : memref<16x128xi32, #tpu.memory_space<vmem>>, vector<16x128xi32>
    %cst = arith.constant dense<0> : vector<16x128xi32>
    %6 = arith.cmpi ne, %5, %cst : vector<16x128xi32>
    %7 = arith.extui %6 : vector<16x128xi1> to vector<16x128xi32>
    %8 = arith.sitofp %7 : vector<16x128xi32> to vector<16x128xf32>
    %9 = arith.mulf %3, %8 : vector<16x128xf32>
    %10 = arith.mulf %4, %8 : vector<16x128xf32>
    %11 = arith.subf %9, %10 : vector<16x128xf32>
    %12 = arith.mulf %11, %11 : vector<16x128xf32>
    %c0_6 = arith.constant 0 : index
    %c0_7 = arith.constant 0 : index
    %c0_8 = arith.constant 0 : index
    %13 = vector.load %arg5[%c0_6, %c0_7, %c0_8] : memref<2x8x128xf32, #tpu.memory_space<vmem>>, vector<1x8x128xf32>
    %14 = vector.shape_cast %13 : vector<1x8x128xf32> to vector<8x128xf32>
    %15 = vector.shape_cast %12 : vector<16x128xf32> to vector<2x8x128xf32>
    %cst_9 = arith.constant dense<0.000000e+00> : vector<8x128xf32>
    %16 = vector.multi_reduction <add>, %15, %cst_9 [0] : vector<2x8x128xf32> to vector<8x128xf32>
    %17 = arith.addf %14, %16 : vector<8x128xf32>
    %c0_10 = arith.constant 0 : index
    %c0_11 = arith.constant 0 : index
    %c0_12 = arith.constant 0 : index
    %18 = vector.load %arg5[%c0_10, %c0_11, %c0_12] : memref<2x8x128xf32, #tpu.memory_space<vmem>>, vector<1x8x128xf32>
    %19 = vector.shape_cast %18 : vector<1x8x128xf32> to vector<8x128xf32>
    %20 = vector.shape_cast %17 : vector<8x128xf32> to vector<1x8x128xf32>
    tpu.vector_store %arg5[%c0_10, %c0_11, %c0_12], %20 {strides = array<i32>} : memref<2x8x128xf32, #tpu.memory_space<vmem>>, vector<1x8x128xf32>,
    %c1 = arith.constant 1 : index
    %c0_13 = arith.constant 0 : index
    %c0_14 = arith.constant 0 : index
    %21 = vector.load %arg5[%c1, %c0_13, %c0_14] : memref<2x8x128xf32, #tpu.memory_space<vmem>>, vector<1x8x128xf32>
    %22 = vector.shape_cast %21 : vector<1x8x128xf32> to vector<8x128xf32>
    %23 = vector.shape_cast %8 : vector<16x128xf32> to vector<2x8x128xf32>
    %cst_15 = arith.constant dense<0.000000e+00> : vector<8x128xf32>
    %24 = vector.multi_reduction <add>, %23, %cst_15 [0] : vector<2x8x128xf32> to vector<8x128xf32>
    %25 = arith.addf %22, %24 : vector<8x128xf32>
    %c1_16 = arith.constant 1 : index
    %c0_17 = arith.constant 0 : index
    %c0_18 = arith.constant 0 : index
    %26 = vector.load %arg5[%c1_16, %c0_17, %c0_18] : memref<2x8x128xf32, #tpu.memory_space<vmem>>, vector<1x8x128xf32>
    %27 = vector.shape_cast %26 : vector<1x8x128xf32> to vector<8x128xf32>
    %28 = vector.shape_cast %25 : vector<8x128xf32> to vector<1x8x128xf32>
    tpu.vector_store %arg5[%c1_16, %c0_17, %c0_18], %28 {strides = array<i32>} : memref<2x8x128xf32, #tpu.memory_space<vmem>>, vector<1x8x128xf32>,
    %c0_i32_19 = arith.constant 0 : i32
    %29 = arith.cmpi eq, %arg0, %c0_i32_19 : i32
    %30 = arith.extui %29 : i1 to i32
    %c0_i32_20 = arith.constant 0 : i32
    %31 = arith.cmpi ne, %30, %c0_i32_20 : i32
    scf.if %31 {
      %c0_21 = arith.constant 0 : index
      %c0_22 = arith.constant 0 : index
      %c0_23 = arith.constant 0 : index
      %32 = vector.load %arg5[%c0_21, %c0_22, %c0_23] : memref<2x8x128xf32, #tpu.memory_space<vmem>>, vector<1x8x128xf32>
      %33 = vector.shape_cast %32 : vector<1x8x128xf32> to vector<8x128xf32>
      %34 = vector.shape_cast %33 : vector<8x128xf32> to vector<1x8x128xf32>
      %cst_24 = arith.constant dense<0.000000e+00> : vector<1xf32>
      %35 = vector.multi_reduction <add>, %34, %cst_24 [1, 2] : vector<1x8x128xf32> to vector<1xf32>
      %36 = vector.shape_cast %35 : vector<1xf32> to vector<1x1x1xf32>
      %37 = vector.extract %36[0, 0, 0] : f32 from vector<1x1x1xf32>
      %c1_25 = arith.constant 1 : index
      %c0_26 = arith.constant 0 : index
      %c0_27 = arith.constant 0 : index
      %38 = vector.load %arg5[%c1_25, %c0_26, %c0_27] : memref<2x8x128xf32, #tpu.memory_space<vmem>>, vector<1x8x128xf32>
      %39 = vector.shape_cast %38 : vector<1x8x128xf32> to vector<8x128xf32>
      %40 = vector.shape_cast %39 : vector<8x128xf32> to vector<1x8x128xf32>
      %cst_28 = arith.constant dense<0.000000e+00> : vector<1xf32>
      %41 = vector.multi_reduction <add>, %40, %cst_28 [1, 2] : vector<1x8x128xf32> to vector<1xf32>
      %42 = vector.shape_cast %41 : vector<1xf32> to vector<1x1x1xf32>
      %43 = vector.extract %42[0, 0, 0] : f32 from vector<1x1x1xf32>
      %44 = arith.divf %37, %43 : f32
      %c0_29 = arith.constant 0 : index
      %45 = memref.load %arg4[%c0_29] : memref<1xf32, #tpu.memory_space<smem>>
      memref.store %44, %arg4[%c0_29] : memref<1xf32, #tpu.memory_space<smem>>
    } else {
    }
    return
  }
  func.func @transform_0(%arg0: i32) -> (i32, i32) {
    %c0_i32 = arith.constant 0 : i32
    %c0_i32_0 = arith.constant 0 : i32
    return %arg0, %c0_i32 : i32, i32
  }
  func.func @transform_1(%arg0: i32) -> (i32, i32) {
    %c0_i32 = arith.constant 0 : i32
    %c0_i32_0 = arith.constant 0 : i32
    return %arg0, %c0_i32 : i32, i32
  }
  func.func @transform_2(%arg0: i32) -> (i32, i32) {
    %c0_i32 = arith.constant 0 : i32
    %c0_i32_0 = arith.constant 0 : i32
    return %arg0, %c0_i32 : i32, i32
  }
  func.func @transform_3(%arg0: i32) -> i32 {
    %c0_i32 = arith.constant 0 : i32
    %c0_i32_0 = arith.constant 0 : i32
    return %c0_i32 : i32
  }
}

</mosaic_0001>

<bundles_post_ra>
// kernel: masked_loss.1
= control target key start
LH: loop header
LB: loop body
LE: loop exit
PB: predicated region body
PF: predicated region fallthrough
CT: control target
= control target key end

     0   :  { %s168_s0 = inlined_call_operand.vmem [shape: f32[16,128], index: 0, kind: input, shape index: {}]   ;;  %s169_s1 = inlined_call_operand.vmem [shape: f32[16,128], index: 1, kind: input, shape index: {}]   ;;  %s170_s2 = inlined_call_operand.vmem [shape: s32[16,128], index: 2, kind: input, shape index: {}]   ;;  %s171_s3 = inlined_call_operand.hbm [shape: f32[1], index: 3, kind: output, shape index: {}]  }
   0x1   :  { %v21_v0 = vld [vmem:[%s168_s0] sm:$0xff]  ;;  %v22_v1 = vld [vmem:[%s168_s0 + $0x8] sm:$0xff] }
   0x2   :  { %v23_v2 = vld [vmem:[%s169_s1] sm:$0xff]  ;;  %v24_v3 = vld [vmem:[%s169_s1 + $0x8] sm:$0xff] }
   0x3   :  { %v25_v4 = vld [vmem:[%s170_s2] sm:$0xff]  ;;  %v26_v5 = vld [vmem:[%s170_s2 + $0x8] sm:$0xff] }
   0x4   :  { %vm27_vm0 = vcmp.ne.s32.totalorder %v25_v4, 0  ;;  %vm28_vm1 = vcmp.ne.s32.totalorder %v26_v5, 0 }
   0x5   :  { %8 = vsyncpa [#allocation4], 0  ;;  %v116_v6 = vmov 0.0   ;;  %s104_s27 = scalar_lea.hbm %s171_s3, 16 }
   0x6   :  { %v92_v7 = vsel %vm27_vm0, 1.0, %v116_v6  ;;  %v93_v8 = vsel %vm28_vm1, 1.0, %v116_v6  ;;  %p105_p0 = scmp.ne.s32.totalorder %s171_s3, %s104_s27  ;;  %p108_p1 = scmp.lt.u32.totalorder %s104_s27, %s171_s3 }
   0x7   :  { %v33_v9 = vmul.f32 %v92_v7, %v21_v0  ;;  %v34_v10 = vmul.f32 %v93_v8, %v22_v1  ;;  %v35_v11 = vmul.f32 %v92_v7, %v23_v2  ;;  %v36_v12 = vmul.f32 %v93_v8, %v24_v3 }
   0x8   :  { %v47_v18 = vadd.f32 %v93_v8, %v92_v7  ;;  %p110_p2 = pnand %p108_p1, %p105_p0 }
   0x9   :  { %v37_v13 = vsub.f32 %v33_v9, %v35_v11  ;;  %v38_v14 = vsub.f32 %v34_v10, %v36_v12 }
   0xb   :  { %v39_v15 = vmul.f32 %v37_v13, %v37_v13  ;;  %v40_v16 = vmul.f32 %v38_v14, %v38_v14 }
   0xd   :  { %v42_v17 = vadd.f32 %v40_v16, %v39_v15 }
   0xf   :  { %54 = vadd.xlane.f32.xlu0 %v42_v17 }
  0x13   :  { %64 = vadd.xlane.f32.xlu0 %v47_v18 }
  0x9c   :  { %v55_v19 = vpop.xlane.xlu0 %54 }
  0x9d   :  { %v56_v20 = vrot.slane %v55_v19, 4 }
  0x9f   :  { %v57_v21 = vadd.f32 %v56_v20, %v55_v19 }
  0xa0   :  { %v65_v22 = vpop.xlane.xlu0 %64 }
  0xa1   :  { %v58_v23 = vrot.slane %v57_v21, 2  ;;  %v66_v24 = vrot.slane %v65_v22, 4 }
  0xa3   :  { %v67_v25 = vadd.f32 %v66_v24, %v65_v22  ;;  %v59_v26 = vadd.f32 %v58_v23, %v57_v21 }
  0xa5   :  { %v68_v27 = vrot.slane %v67_v25, 2  ;;  %v60_v28 = vrot.slane %v59_v26, 1 }
  0xa7   :  { %v69_v29 = vadd.f32 %v68_v27, %v67_v25  ;;  %v61_v30 = vadd.f32 %v60_v28, %v59_v26 }
  0xa9   :  { %94 = vpush %v61_v30  ;;  %v70_v31 = vrot.slane %v69_v29, 1 }
  0xab   :  { %v71_v32 = vadd.f32 %v70_v31, %v69_v29 }
  0xad   :  { %96 = vpush %v71_v32 }
  0xda   :  { %s95_s0 = spop %94 }
  0xde   :  { %s97_s1 = spop %96 }
  0xdf   :  { %v73_v33 = vstv %s97_s1 }
  0xe0   :  { %102 = vrcp.f32 %v73_v33 }
  0xea   :  { %v103_v34 = vpop.eup %102 }
  0xeb   :  { %98 = vpush %v103_v34 }
 0x11c   :  { %s99_s2 = spop %98 }
 0x11d   :  { %s76_s24 = smul.f32 %s99_s2, %s95_s0 }
 0x11f   :  { %78 = sst [smem:[#allocation3]] %s76_s24 }
 0x120   :  { %113 = shalt.err (!%p110_p2)
}
 0x121   :  { %s117_s5 = smov [#allocation3]  }
 0x122   :  { %86 = dma.smem_to_hbm %s117_s5, 16, %s171_s3, [#allocation4]  }
 0x123   :  { %114 = dma.done.wait [#allocation4], 16  }
 0x124   :  { %115 = vsyncadd [#allocation4], 4294967280 }
 0x125   :  { %90 = sfence }
 0x126   :  { %91 = vsyncpa [#allocation4], 1 }

</bundles_post_ra>
